<compile_context>
chip_gen: v7x
topology: tpu7x:2x2x1
jax: 0.10.0
libtpu: 0.0.40
codegen_flags: <defaults>
</compile_context>

<pallas_src>
import jax
import jax.numpy as jnp
from jax.experimental import pallas as pl
from jax.experimental.pallas import tpu as pltpu


def _round_up(n, m):
    return ((n + m - 1) // m) * m


def _cnn_kernel(x_ref,
                w1_ref, b1_ref, s1_ref, t1_ref,
                w2_ref, b2_ref, s2_ref, t2_ref,
                w3_ref, b3_ref, s3_ref, t3_ref,
                wf1_ref, bf1_ref, wf2_ref, bf2_ref,
                out_ref):
    """One grid step == one block of `bblk` batch examples.

    Activation row layout is (l * bblk + b): sequence position major, batch
    minor; channels live on the 128-lane axis so every layer is a single MXU
    matmul with a deep, dense K.
    """
    L, bblk = x_ref.shape[0], x_ref.shape[1]
    L2, L4 = L // 2, L // 4
    f32, bf16 = jnp.float32, jnp.bfloat16

    # ---- conv1 (Cin=1, k=5, pad=2) as ONE MXU matmul on the im2col'd input ----
    # x_ref[l, b, k] = x[b, l+k-2] (taps padded 5 -> 8 lanes), w1 = (8, 32).
    xc = x_ref[...].reshape(L * bblk, 8)
    h1 = jnp.dot(xc, w1_ref[...], preferred_element_type=f32)
    h1 = jnp.maximum(h1 + b1_ref[...], 0.0) * s1_ref[...] + t1_ref[...]   # relu -> BN

    # maxpool(2): pair consecutive sequence positions.
    h1_4 = h1.reshape(L2, 2, bblk, 32)
    p1 = jnp.maximum(h1_4[:, 0], h1_4[:, 1])                              # (L2, bblk, 32)

    # ---- conv2 (32 -> 64): tap-fused im2col matmul, K = 5*32 = 160 ----
    zpad1 = jnp.zeros((2, bblk, 32), f32)
    p1p = jnp.concatenate([zpad1, p1, zpad1], axis=0)                     # (L2+4, bblk, 32)
    lhs2 = jnp.concatenate(
        [p1p[k:k + L2].reshape(L2 * bblk, 32) for k in range(5)], axis=-1)
    h2 = jnp.dot(lhs2.astype(bf16), w2_ref[...], preferred_element_type=f32)
    h2 = jnp.maximum(h2 + b2_ref[...], 0.0) * s2_ref[...] + t2_ref[...]

    # maxpool(2)
    h2_4 = h2.reshape(L4, 2, bblk, 64)
    p2 = jnp.maximum(h2_4[:, 0], h2_4[:, 1])                              # (L4, bblk, 64)

    # ---- conv3 (64 -> 128): tap-fused im2col matmul, K = 5*64 = 320 ----
    zpad2 = jnp.zeros((2, bblk, 64), f32)
    p2p = jnp.concatenate([zpad2, p2, zpad2], axis=0)                     # (L4+4, bblk, 64)
    lhs3 = jnp.concatenate(
        [p2p[k:k + L4].reshape(L4 * bblk, 64) for k in range(5)], axis=-1)
    h3 = jnp.dot(lhs3.astype(bf16), w3_ref[...], preferred_element_type=f32)
    h3 = jnp.maximum(h3 + b3_ref[...], 0.0) * s3_ref[...] + t3_ref[...]   # (L4*bblk, 128)

    # ---- fc1: ONE matmul with K = L4*128 (wf1 already folds torch's
    # channel-major flatten).  Dropout(0.1) is identity in eval mode. ----
    h3_3 = h3.reshape(L4, bblk, 128)
    lhs_f = jnp.concatenate([h3_3[l] for l in range(L4)], axis=-1)        # (bblk, L4*128)
    z = jnp.dot(lhs_f.astype(bf16), wf1_ref[...], preferred_element_type=f32)
    z = jnp.maximum(z + bf1_ref[...], 0.0)

    # ---- fc2 into a lane-dense (padded) output block ----
    out = jnp.dot(z.astype(bf16), wf2_ref[...], preferred_element_type=f32) + bf2_ref[...]
    out_ref[...] = out.astype(out_ref.dtype)


def cnn_forward(x_ncl, params, block_b=256):
    """x_ncl: (B, 1, L) float32 (PyTorch NCL). Returns (B, n_outputs) float32."""
    B, cin, L = x_ncl.shape
    assert cin == 1 and L % 4 == 0 and L >= 4
    n_out = params["wf2"].shape[1]
    n_pad = max(128, _round_up(n_out, 128))          # lane-dense output writeback

    # Batch block: multiple of 8; give moderate/large batches >= 2 grid steps so
    # dimension_semantics=("parallel",) can shard across v7x's two TensorCores.
    if B >= 16:
        bblk = min(block_b, _round_up((B + 1) // 2, 8))
    else:
        bblk = _round_up(max(B, 1), 8)
    # Keep the per-step live working set comfortably inside scoped VMEM (rough
    # upper bound on f32 intermediates per example).
    per_row_bytes = 4 * (L * 192 + 2048)
    bblk = min(bblk, max(8, ((10 * 1024 * 1024) // per_row_bytes) // 8 * 8))
    B_pad = _round_up(B, bblk)

    # conv1 im2col on the wrapper side: xcol[l, b, k] = x[b, 0, l+k-2] (zero pad),
    # taps padded 5 -> 8 lanes, bf16 for the MXU.
    x_l = jnp.transpose(x_ncl[:, 0, :], (1, 0))                       # (L, B)
    x_lp = jnp.pad(x_l, ((2, 2), (0, 0)))
    xcol = jnp.stack([x_lp[k:k + L] for k in range(5)], axis=-1)      # (L, B, 5)
    xcol = jnp.pad(xcol, ((0, 0), (0, B_pad - B), (0, 3))).astype(jnp.bfloat16)

    wf2p = jnp.pad(params["wf2"], ((0, 0), (0, n_pad - n_out))).astype(jnp.bfloat16)
    bf2p = jnp.pad(params["bf2"], ((0, 0), (0, n_pad - n_out)))

    w_args = [params["w1"], params["b1"], params["s1"], params["t1"],
              params["w2"], params["b2"], params["s2"], params["t2"],
              params["w3"], params["b3"], params["s3"], params["t3"],
              params["wf1"], params["bf1"], wf2p, bf2p]

    def const_spec(a):
        nd = a.ndim
        return pl.BlockSpec(a.shape, lambda i, _nd=nd: (0,) * _nd)

    in_specs = [pl.BlockSpec((L, bblk, 8), lambda i: (0, i, 0))]
    in_specs += [const_spec(a) for a in w_args]

    out = pl.pallas_call(
        _cnn_kernel,
        out_shape=jax.ShapeDtypeStruct((B_pad, n_pad), jnp.float32),
        grid_spec=pltpu.PrefetchScalarGridSpec(
            num_scalar_prefetch=0,
            grid=(B_pad // bblk,),
            in_specs=in_specs,
            out_specs=pl.BlockSpec((bblk, n_pad), lambda i: (i, 0)),
        ),
        compiler_params=pltpu.CompilerParams(
            dimension_semantics=("parallel",),
            vmem_limit_bytes=32 * 1024 * 1024,
        ),
    )(xcol, *w_args)
    return out[:B, :n_out]


# ---------------- deterministic synthetic parameters (PyTorch layouts) ----------------

def init_torch_params(key, L, n_out):
    ks = jax.random.split(key, 13)

    def nrm(k, shape, scale=0.1):
        return scale * jax.random.normal(k, shape, jnp.float32)

    def bn(k, C):
        k1, k2, k3, k4 = jax.random.split(k, 4)
        gamma = jax.random.uniform(k1, (C,), jnp.float32, 0.8, 1.2)
        beta = 0.1 * jax.random.normal(k2, (C,), jnp.float32)
        mean = 0.1 * jax.random.normal(k3, (C,), jnp.float32)
        var = jax.random.uniform(k4, (C,), jnp.float32, 0.5, 1.5)
        return (gamma, beta, mean, var)

    return dict(
        conv1_w=nrm(ks[0], (32, 1, 5)),   conv1_b=nrm(ks[1], (32,)),
        conv2_w=nrm(ks[2], (64, 32, 5)),  conv2_b=nrm(ks[3], (64,)),
        conv3_w=nrm(ks[4], (128, 64, 5)), conv3_b=nrm(ks[5], (128,)),
        fc1_w=nrm(ks[6], (64, 128 * L // 4)), fc1_b=nrm(ks[7], (64,)),
        fc2_w=nrm(ks[8], (n_out, 64)),    fc2_b=nrm(ks[9], (n_out,)),
        bn1=bn(ks[10], 32), bn2=bn(ks[11], 64), bn3=bn(ks[12], 128),
    )


def to_kernel_params(tp, L):
    """Fold eval-mode BN and pre-shape all weights for the fused-tap kernel."""
    L4 = L // 4
    eps = 1e-5
    bf16 = jnp.bfloat16

    def fold(bn_stats):
        gamma, beta, mean, var = bn_stats
        scale = gamma / jnp.sqrt(var + eps)
        shift = beta - mean * scale
        return scale, shift

    s1, t1 = fold(tp["bn1"]); s2, t2 = fold(tp["bn2"]); s3, t3 = fold(tp["bn3"])
    n_out = tp["fc2_w"].shape[0]

    # conv1: (32,1,5) -> (5,32), taps padded to 8 rows -> (8,32) bf16
    w1 = jnp.transpose(tp["conv1_w"], (2, 1, 0)).reshape(5, 32)
    w1 = jnp.pad(w1, ((0, 3), (0, 0))).astype(bf16)
    # conv2/conv3: tap-major concatenated K: w[k*Cin + cin, cout]
    w2 = jnp.transpose(tp["conv2_w"], (2, 1, 0)).reshape(5 * 32, 64).astype(bf16)
    w3 = jnp.transpose(tp["conv3_w"], (2, 1, 0)).reshape(5 * 64, 128).astype(bf16)
    # fc1: wf1[l*128 + c, j] = fc1_w[j, c*L4 + l]  (torch channel-major flatten)
    wf1 = jnp.transpose(tp["fc1_w"].reshape(64, 128, L4), (2, 1, 0))
    wf1 = wf1.reshape(L4 * 128, 64).astype(bf16)

    return dict(
        w1=w1, b1=tp["conv1_b"].reshape(1, 32),
        s1=s1.reshape(1, 32), t1=t1.reshape(1, 32),
        w2=w2, b2=tp["conv2_b"].reshape(1, 64),
        s2=s2.reshape(1, 64), t2=t2.reshape(1, 64),
        w3=w3, b3=tp["conv3_b"].reshape(1, 128),
        s3=s3.reshape(1, 128), t3=t3.reshape(1, 128),
        wf1=wf1, bf1=tp["fc1_b"].reshape(1, 64),
        wf2=jnp.transpose(tp["fc2_w"], (1, 0)),          # (64, n_out), padded in wrapper
        bf2=tp["fc2_b"].reshape(1, n_out),
    )


# ---------------- pure-JAX f32 reference (torch NCL semantics) ----------------

def reference_forward(x, tp):
    eps = 1e-5
    relu = lambda h: jnp.maximum(h, 0.0)

    def conv1d(h, w, b):
        Lh = h.shape[2]
        hp = jnp.pad(h, ((0, 0), (0, 0), (2, 2)))
        out = jnp.zeros((h.shape[0], w.shape[0], Lh), jnp.float32)
        for k in range(5):
            out = out + jnp.einsum("bil,oi->bol", hp[:, :, k:k + Lh], w[:, :, k])
        return out + b[None, :, None]

    def bn(h, stats):
        gamma, beta, mean, var = stats
        return ((h - mean[None, :, None]) / jnp.sqrt(var[None, :, None] + eps)
                * gamma[None, :, None] + beta[None, :, None])

    def pool(h):
        Bh, C, Lh = h.shape
        return jnp.max(h.reshape(Bh, C, Lh // 2, 2), axis=-1)

    h = pool(bn(relu(conv1d(x, tp["conv1_w"], tp["conv1_b"])), tp["bn1"]))
    h = pool(bn(relu(conv1d(h, tp["conv2_w"], tp["conv2_b"])), tp["bn2"]))
    h = bn(relu(conv1d(h, tp["conv3_w"], tp["conv3_b"])), tp["bn3"])
    f = h.reshape(h.shape[0], -1)                                   # channel-major flatten
    z = relu(f @ tp["fc1_w"].T + tp["fc1_b"])
    return z @ tp["fc2_w"].T + tp["fc2_b"]


if __name__ == "__main__":
    B, L, n_out = 2, 16, 4            # dataset_shape = 16, n_outputs = 4
    key = jax.random.PRNGKey(0)
    kx, kp, kx2 = jax.random.split(key, 3)

    tp = init_torch_params(kp, L, n_out)
    params = to_kernel_params(tp, L)

    # bf16 MXU operands (f32 accumulation) => compare with a looser tolerance
    # than a pure-f32 kernel would need.
    RTOL = ATOL = 2e-2

    # -- small batch (exercises batch padding to the 8-row minimum block) --
    x = jax.random.normal(kx, (B, 1, L), jnp.float32)    # PyTorch NCL input
    out = jax.block_until_ready(cnn_forward(x, params))
    ref = reference_forward(x, tp)
    assert out.shape == (B, n_out), out.shape
    if not jnp.allclose(out, ref, rtol=RTOL, atol=ATOL):
        raise AssertionError(f"Pallas/reference mismatch (B={B}):\n{out}\nvs\n{ref}")

    # -- larger batch (exercises the multi-step 'parallel' grid) --
    B2 = 200
    x2 = jax.random.normal(kx2, (B2, 1, L), jnp.float32)
    out2 = jax.block_until_ready(cnn_forward(x2, params))
    ref2 = reference_forward(x2, tp)
    assert out2.shape == (B2, n_out), out2.shape
    if not jnp.allclose(out2, ref2, rtol=RTOL, atol=ATOL):
        err = jnp.max(jnp.abs(out2 - ref2))
        raise AssertionError(f"Pallas/reference mismatch (B={B2}), max abs err={err}")

    print("KERNEL_OK")
</pallas_src>

<mosaic_0001>
module attributes {stable_mosaic.version = 11 : i64} {
  func.func @_cnn_kernel(%arg0: i32, %arg1: memref<16x8x8xbf16, #tpu.memory_space<vmem>>, %arg2: memref<8x32xbf16, #tpu.memory_space<vmem>>, %arg3: memref<1x32xf32, #tpu.memory_space<vmem>>, %arg4: memref<1x32xf32, #tpu.memory_space<vmem>>, %arg5: memref<1x32xf32, #tpu.memory_space<vmem>>, %arg6: memref<160x64xbf16, #tpu.memory_space<vmem>>, %arg7: memref<1x64xf32, #tpu.memory_space<vmem>>, %arg8: memref<1x64xf32, #tpu.memory_space<vmem>>, %arg9: memref<1x64xf32, #tpu.memory_space<vmem>>, %arg10: memref<320x128xbf16, #tpu.memory_space<vmem>>, %arg11: memref<1x128xf32, #tpu.memory_space<vmem>>, %arg12: memref<1x128xf32, #tpu.memory_space<vmem>>, %arg13: memref<1x128xf32, #tpu.memory_space<vmem>>, %arg14: memref<512x64xbf16, #tpu.memory_space<vmem>>, %arg15: memref<1x64xf32, #tpu.memory_space<vmem>>, %arg16: memref<64x128xbf16, #tpu.memory_space<vmem>>, %arg17: memref<1x128xf32, #tpu.memory_space<vmem>>, %arg18: memref<8x128xf32, #tpu.memory_space<vmem>>) attributes {dimension_semantics = [#tpu.dimension_semantics<parallel>], iteration_bounds = array<i64: 1>, scalar_prefetch = 0 : i64, scratch_operands = 0 : i64, tpu.core_type = #tpu.core_type<tc>, window_params = [{transform_indices = @transform_0, window_bounds = array<i64: 16, 8, 8>}, {pipeline_mode = #tpu.pipeline_mode<synchronous>, transform_indices = @transform_1, window_bounds = array<i64: 8, 32>}, {pipeline_mode = #tpu.pipeline_mode<synchronous>, transform_indices = @transform_2, window_bounds = array<i64: 1, 32>}, {pipeline_mode = #tpu.pipeline_mode<synchronous>, transform_indices = @transform_3, window_bounds = array<i64: 1, 32>}, {pipeline_mode = #tpu.pipeline_mode<synchronous>, transform_indices = @transform_4, window_bounds = array<i64: 1, 32>}, {pipeline_mode = #tpu.pipeline_mode<synchronous>, transform_indices = @transform_5, window_bounds = array<i64: 160, 64>}, {pipeline_mode = #tpu.pipeline_mode<synchronous>, transform_indices = @transform_6, window_bounds = array<i64: 1, 64>}, {pipeline_mode = #tpu.pipeline_mode<synchronous>, transform_indices = @transform_7, window_bounds = array<i64: 1, 64>}, {pipeline_mode = #tpu.pipeline_mode<synchronous>, transform_indices = @transform_8, window_bounds = array<i64: 1, 64>}, {pipeline_mode = #tpu.pipeline_mode<synchronous>, transform_indices = @transform_9, window_bounds = array<i64: 320, 128>}, {pipeline_mode = #tpu.pipeline_mode<synchronous>, transform_indices = @transform_10, window_bounds = array<i64: 1, 128>}, {pipeline_mode = #tpu.pipeline_mode<synchronous>, transform_indices = @transform_11, window_bounds = array<i64: 1, 128>}, {pipeline_mode = #tpu.pipeline_mode<synchronous>, transform_indices = @transform_12, window_bounds = array<i64: 1, 128>}, {pipeline_mode = #tpu.pipeline_mode<synchronous>, transform_indices = @transform_13, window_bounds = array<i64: 512, 64>}, {pipeline_mode = #tpu.pipeline_mode<synchronous>, transform_indices = @transform_14, window_bounds = array<i64: 1, 64>}, {pipeline_mode = #tpu.pipeline_mode<synchronous>, transform_indices = @transform_15, window_bounds = array<i64: 64, 128>}, {pipeline_mode = #tpu.pipeline_mode<synchronous>, transform_indices = @transform_16, window_bounds = array<i64: 1, 128>}, {transform_indices = @transform_17, window_bounds = array<i64: 8, 128>}]} {
    %c0 = arith.constant 0 : index
    %c0_0 = arith.constant 0 : index
    %c0_1 = arith.constant 0 : index
    %0 = vector.load %arg1[%c0, %c0_0, %c0_1] : memref<16x8x8xbf16, #tpu.memory_space<vmem>>, vector<16x8x8xbf16>
    %1 = vector.shape_cast %0 : vector<16x8x8xbf16> to vector<128x8xbf16>
    %c0_2 = arith.constant 0 : index
    %c0_3 = arith.constant 0 : index
    %2 = vector.load %arg2[%c0_2, %c0_3] : memref<8x32xbf16, #tpu.memory_space<vmem>>, vector<8x32xbf16>
    %cst = arith.constant dense<0.000000e+00> : vector<128x32xf32>
    %3 = tpu.matmul %1, %2, %cst {dimension_numbers = #tpu.dot_dimension_numbers<[1], [0], [0], [1], [0, 0, 1, 1], [], []>} : vector<128x8xbf16>, vector<8x32xbf16>, vector<128x32xf32> -> vector<128x32xf32>
    %c0_4 = arith.constant 0 : index
    %c0_5 = arith.constant 0 : index
    %4 = vector.load %arg3[%c0_4, %c0_5] : memref<1x32xf32, #tpu.memory_space<vmem>>, vector<1x32xf32>
    %5 = vector.broadcast %4 : vector<1x32xf32> to vector<128x32xf32>
    %6 = arith.addf %3, %5 : vector<128x32xf32>
    %cst_6 = arith.constant 0.000000e+00 : f32
    %7 = vector.broadcast %cst_6 : f32 to vector<128x32xf32>
    %8 = arith.maximumf %6, %7 : vector<128x32xf32>
    %c0_7 = arith.constant 0 : index
    %c0_8 = arith.constant 0 : index
    %9 = vector.load %arg4[%c0_7, %c0_8] : memref<1x32xf32, #tpu.memory_space<vmem>>, vector<1x32xf32>
    %10 = vector.broadcast %9 : vector<1x32xf32> to vector<128x32xf32>
    %11 = arith.mulf %8, %10 : vector<128x32xf32>
    %c0_9 = arith.constant 0 : index
    %c0_10 = arith.constant 0 : index
    %12 = vector.load %arg5[%c0_9, %c0_10] : memref<1x32xf32, #tpu.memory_space<vmem>>, vector<1x32xf32>
    %13 = vector.broadcast %12 : vector<1x32xf32> to vector<128x32xf32>
    %14 = arith.addf %11, %13 : vector<128x32xf32>
    %15 = vector.shape_cast %14 : vector<128x32xf32> to vector<8x2x8x32xf32>
    %16 = vector.extract_strided_slice %15 {offsets = [0, 0, 0, 0], sizes = [8, 1, 8, 32], strides = [1, 1, 1, 1]} : vector<8x2x8x32xf32> to vector<8x1x8x32xf32>
    %17 = vector.shape_cast %16 : vector<8x1x8x32xf32> to vector<8x8x32xf32>
    %18 = vector.extract_strided_slice %15 {offsets = [0, 1, 0, 0], sizes = [8, 1, 8, 32], strides = [1, 1, 1, 1]} : vector<8x2x8x32xf32> to vector<8x1x8x32xf32>
    %19 = vector.shape_cast %18 : vector<8x1x8x32xf32> to vector<8x8x32xf32>
    %20 = arith.maximumf %17, %19 : vector<8x8x32xf32>
    %cst_11 = arith.constant 0.000000e+00 : f32
    %21 = vector.broadcast %cst_11 : f32 to vector<2x8x32xf32>
    %22 = tpu.concatenate %21, %20, %21 in 0 : vector<2x8x32xf32>, vector<8x8x32xf32>, vector<2x8x32xf32> -> vector<12x8x32xf32>
    %23 = vector.extract_strided_slice %22 {offsets = [0, 0, 0], sizes = [8, 8, 32], strides = [1, 1, 1]} : vector<12x8x32xf32> to vector<8x8x32xf32>
    %24 = vector.shape_cast %23 : vector<8x8x32xf32> to vector<64x32xf32>
    %25 = vector.extract_strided_slice %22 {offsets = [1, 0, 0], sizes = [8, 8, 32], strides = [1, 1, 1]} : vector<12x8x32xf32> to vector<8x8x32xf32>
    %26 = vector.shape_cast %25 : vector<8x8x32xf32> to vector<64x32xf32>
    %27 = vector.extract_strided_slice %22 {offsets = [2, 0, 0], sizes = [8, 8, 32], strides = [1, 1, 1]} : vector<12x8x32xf32> to vector<8x8x32xf32>
    %28 = vector.shape_cast %27 : vector<8x8x32xf32> to vector<64x32xf32>
    %29 = vector.extract_strided_slice %22 {offsets = [3, 0, 0], sizes = [8, 8, 32], strides = [1, 1, 1]} : vector<12x8x32xf32> to vector<8x8x32xf32>
    %30 = vector.shape_cast %29 : vector<8x8x32xf32> to vector<64x32xf32>
    %31 = vector.extract_strided_slice %22 {offsets = [4, 0, 0], sizes = [8, 8, 32], strides = [1, 1, 1]} : vector<12x8x32xf32> to vector<8x8x32xf32>
    %32 = vector.shape_cast %31 : vector<8x8x32xf32> to vector<64x32xf32>
    %33 = tpu.concatenate %24, %26, %28, %30, %32 in 1 : vector<64x32xf32>, vector<64x32xf32>, vector<64x32xf32>, vector<64x32xf32>, vector<64x32xf32> -> vector<64x160xf32>
    %34 = arith.truncf %33 : vector<64x160xf32> to vector<64x160xbf16>
    %c0_12 = arith.constant 0 : index
    %c0_13 = arith.constant 0 : index
    %35 = vector.load %arg6[%c0_12, %c0_13] : memref<160x64xbf16, #tpu.memory_space<vmem>>, vector<160x64xbf16>
    %cst_14 = arith.constant dense<0.000000e+00> : vector<64x64xf32>
    %36 = tpu.matmul %34, %35, %cst_14 {dimension_numbers = #tpu.dot_dimension_numbers<[1], [0], [0], [1], [0, 0, 1, 1], [], []>} : vector<64x160xbf16>, vector<160x64xbf16>, vector<64x64xf32> -> vector<64x64xf32>
    %c0_15 = arith.constant 0 : index
    %c0_16 = arith.constant 0 : index
    %37 = vector.load %arg7[%c0_15, %c0_16] : memref<1x64xf32, #tpu.memory_space<vmem>>, vector<1x64xf32>
    %38 = vector.broadcast %37 : vector<1x64xf32> to vector<64x64xf32>
    %39 = arith.addf %36, %38 : vector<64x64xf32>
    %cst_17 = arith.constant 0.000000e+00 : f32
    %40 = vector.broadcast %cst_17 : f32 to vector<64x64xf32>
    %41 = arith.maximumf %39, %40 : vector<64x64xf32>
    %c0_18 = arith.constant 0 : index
    %c0_19 = arith.constant 0 : index
    %42 = vector.load %arg8[%c0_18, %c0_19] : memref<1x64xf32, #tpu.memory_space<vmem>>, vector<1x64xf32>
    %43 = vector.broadcast %42 : vector<1x64xf32> to vector<64x64xf32>
    %44 = arith.mulf %41, %43 : vector<64x64xf32>
    %c0_20 = arith.constant 0 : index
    %c0_21 = arith.constant 0 : index
    %45 = vector.load %arg9[%c0_20, %c0_21] : memref<1x64xf32, #tpu.memory_space<vmem>>, vector<1x64xf32>
    %46 = vector.broadcast %45 : vector<1x64xf32> to vector<64x64xf32>
    %47 = arith.addf %44, %46 : vector<64x64xf32>
    %48 = vector.shape_cast %47 : vector<64x64xf32> to vector<4x2x8x64xf32>
    %49 = vector.extract_strided_slice %48 {offsets = [0, 0, 0, 0], sizes = [4, 1, 8, 64], strides = [1, 1, 1, 1]} : vector<4x2x8x64xf32> to vector<4x1x8x64xf32>
    %50 = vector.shape_cast %49 : vector<4x1x8x64xf32> to vector<4x8x64xf32>
    %51 = vector.extract_strided_slice %48 {offsets = [0, 1, 0, 0], sizes = [4, 1, 8, 64], strides = [1, 1, 1, 1]} : vector<4x2x8x64xf32> to vector<4x1x8x64xf32>
    %52 = vector.shape_cast %51 : vector<4x1x8x64xf32> to vector<4x8x64xf32>
    %53 = arith.maximumf %50, %52 : vector<4x8x64xf32>
    %cst_22 = arith.constant 0.000000e+00 : f32
    %54 = vector.broadcast %cst_22 : f32 to vector<2x8x64xf32>
    %55 = tpu.concatenate %54, %53, %54 in 0 : vector<2x8x64xf32>, vector<4x8x64xf32>, vector<2x8x64xf32> -> vector<8x8x64xf32>
    %56 = vector.extract_strided_slice %55 {offsets = [0, 0, 0], sizes = [4, 8, 64], strides = [1, 1, 1]} : vector<8x8x64xf32> to vector<4x8x64xf32>
    %57 = vector.shape_cast %56 : vector<4x8x64xf32> to vector<32x64xf32>
    %58 = vector.extract_strided_slice %55 {offsets = [1, 0, 0], sizes = [4, 8, 64], strides = [1, 1, 1]} : vector<8x8x64xf32> to vector<4x8x64xf32>
    %59 = vector.shape_cast %58 : vector<4x8x64xf32> to vector<32x64xf32>
    %60 = vector.extract_strided_slice %55 {offsets = [2, 0, 0], sizes = [4, 8, 64], strides = [1, 1, 1]} : vector<8x8x64xf32> to vector<4x8x64xf32>
    %61 = vector.shape_cast %60 : vector<4x8x64xf32> to vector<32x64xf32>
    %62 = vector.extract_strided_slice %55 {offsets = [3, 0, 0], sizes = [4, 8, 64], strides = [1, 1, 1]} : vector<8x8x64xf32> to vector<4x8x64xf32>
    %63 = vector.shape_cast %62 : vector<4x8x64xf32> to vector<32x64xf32>
    %64 = vector.extract_strided_slice %55 {offsets = [4, 0, 0], sizes = [4, 8, 64], strides = [1, 1, 1]} : vector<8x8x64xf32> to vector<4x8x64xf32>
    %65 = vector.shape_cast %64 : vector<4x8x64xf32> to vector<32x64xf32>
    %66 = tpu.concatenate %57, %59, %61, %63, %65 in 1 : vector<32x64xf32>, vector<32x64xf32>, vector<32x64xf32>, vector<32x64xf32>, vector<32x64xf32> -> vector<32x320xf32>
    %67 = arith.truncf %66 : vector<32x320xf32> to vector<32x320xbf16>
    %c0_23 = arith.constant 0 : index
    %c0_24 = arith.constant 0 : index
    %68 = vector.load %arg10[%c0_23, %c0_24] : memref<320x128xbf16, #tpu.memory_space<vmem>>, vector<320x128xbf16>
    %cst_25 = arith.constant dense<0.000000e+00> : vector<32x128xf32>
    %69 = tpu.matmul %67, %68, %cst_25 {dimension_numbers = #tpu.dot_dimension_numbers<[1], [0], [0], [1], [0, 0, 1, 1], [], []>} : vector<32x320xbf16>, vector<320x128xbf16>, vector<32x128xf32> -> vector<32x128xf32>
    %c0_26 = arith.constant 0 : index
    %c0_27 = arith.constant 0 : index
    %70 = vector.load %arg11[%c0_26, %c0_27] : memref<1x128xf32, #tpu.memory_space<vmem>>, vector<1x128xf32>
    %71 = vector.broadcast %70 : vector<1x128xf32> to vector<32x128xf32>
    %72 = arith.addf %69, %71 : vector<32x128xf32>
    %cst_28 = arith.constant 0.000000e+00 : f32
    %73 = vector.broadcast %cst_28 : f32 to vector<32x128xf32>
    %74 = arith.maximumf %72, %73 : vector<32x128xf32>
    %c0_29 = arith.constant 0 : index
    %c0_30 = arith.constant 0 : index
    %75 = vector.load %arg12[%c0_29, %c0_30] : memref<1x128xf32, #tpu.memory_space<vmem>>, vector<1x128xf32>
    %76 = vector.broadcast %75 : vector<1x128xf32> to vector<32x128xf32>
    %77 = arith.mulf %74, %76 : vector<32x128xf32>
    %c0_31 = arith.constant 0 : index
    %c0_32 = arith.constant 0 : index
    %78 = vector.load %arg13[%c0_31, %c0_32] : memref<1x128xf32, #tpu.memory_space<vmem>>, vector<1x128xf32>
    %79 = vector.broadcast %78 : vector<1x128xf32> to vector<32x128xf32>
    %80 = arith.addf %77, %79 : vector<32x128xf32>
    %81 = vector.shape_cast %80 : vector<32x128xf32> to vector<4x8x128xf32>
    %82 = vector.extract_strided_slice %81 {offsets = [0, 0, 0], sizes = [1, 8, 128], strides = [1, 1, 1]} : vector<4x8x128xf32> to vector<1x8x128xf32>
    %83 = vector.shape_cast %82 : vector<1x8x128xf32> to vector<8x128xf32>
    %84 = vector.extract_strided_slice %81 {offsets = [1, 0, 0], sizes = [1, 8, 128], strides = [1, 1, 1]} : vector<4x8x128xf32> to vector<1x8x128xf32>
    %85 = vector.shape_cast %84 : vector<1x8x128xf32> to vector<8x128xf32>
    %86 = vector.extract_strided_slice %81 {offsets = [2, 0, 0], sizes = [1, 8, 128], strides = [1, 1, 1]} : vector<4x8x128xf32> to vector<1x8x128xf32>
    %87 = vector.shape_cast %86 : vector<1x8x128xf32> to vector<8x128xf32>
    %88 = vector.extract_strided_slice %81 {offsets = [3, 0, 0], sizes = [1, 8, 128], strides = [1, 1, 1]} : vector<4x8x128xf32> to vector<1x8x128xf32>
    %89 = vector.shape_cast %88 : vector<1x8x128xf32> to vector<8x128xf32>
    %90 = tpu.concatenate %83, %85, %87, %89 in 1 : vector<8x128xf32>, vector<8x128xf32>, vector<8x128xf32>, vector<8x128xf32> -> vector<8x512xf32>
    %91 = arith.truncf %90 : vector<8x512xf32> to vector<8x512xbf16>
    %c0_33 = arith.constant 0 : index
    %c0_34 = arith.constant 0 : index
    %92 = vector.load %arg14[%c0_33, %c0_34] : memref<512x64xbf16, #tpu.memory_space<vmem>>, vector<512x64xbf16>
    %cst_35 = arith.constant dense<0.000000e+00> : vector<8x64xf32>
    %93 = tpu.matmul %91, %92, %cst_35 {dimension_numbers = #tpu.dot_dimension_numbers<[1], [0], [0], [1], [0, 0, 1, 1], [], []>} : vector<8x512xbf16>, vector<512x64xbf16>, vector<8x64xf32> -> vector<8x64xf32>
    %c0_36 = arith.constant 0 : index
    %c0_37 = arith.constant 0 : index
    %94 = vector.load %arg15[%c0_36, %c0_37] : memref<1x64xf32, #tpu.memory_space<vmem>>, vector<1x64xf32>
    %95 = vector.broadcast %94 : vector<1x64xf32> to vector<8x64xf32>
    %96 = arith.addf %93, %95 : vector<8x64xf32>
    %cst_38 = arith.constant 0.000000e+00 : f32
    %97 = vector.broadcast %cst_38 : f32 to vector<8x64xf32>
    %98 = arith.maximumf %96, %97 : vector<8x64xf32>
    %99 = arith.truncf %98 : vector<8x64xf32> to vector<8x64xbf16>
    %c0_39 = arith.constant 0 : index
    %c0_40 = arith.constant 0 : index
    %100 = vector.load %arg16[%c0_39, %c0_40] : memref<64x128xbf16, #tpu.memory_space<vmem>>, vector<64x128xbf16>
    %cst_41 = arith.constant dense<0.000000e+00> : vector<8x128xf32>
    %101 = tpu.matmul %99, %100, %cst_41 {dimension_numbers = #tpu.dot_dimension_numbers<[1], [0], [0], [1], [0, 0, 1, 1], [], []>} : vector<8x64xbf16>, vector<64x128xbf16>, vector<8x128xf32> -> vector<8x128xf32>
    %c0_42 = arith.constant 0 : index
    %c0_43 = arith.constant 0 : index
    %102 = vector.load %arg17[%c0_42, %c0_43] : memref<1x128xf32, #tpu.memory_space<vmem>>, vector<1x128xf32>
    %103 = vector.broadcast %102 : vector<1x128xf32> to vector<8x128xf32>
    %104 = arith.addf %101, %103 : vector<8x128xf32>
    %c0_44 = arith.constant 0 : index
    %c0_45 = arith.constant 0 : index
    %105 = vector.load %arg18[%c0_44, %c0_45] : memref<8x128xf32, #tpu.memory_space<vmem>>, vector<8x128xf32>
    tpu.vector_store %arg18[%c0_44, %c0_45], %104 {strides = array<i32>} : memref<8x128xf32, #tpu.memory_space<vmem>>, vector<8x128xf32>,
    return
  }
  func.func @transform_0(%arg0: i32) -> (i32, i32, i32) {
    %c0_i32 = arith.constant 0 : i32
    %c0_i32_0 = arith.constant 0 : i32
    %c0_i32_1 = arith.constant 0 : i32
    return %c0_i32, %arg0, %c0_i32_0 : i32, i32, i32
  }
  func.func @transform_1(%arg0: i32) -> (i32, i32) {
    %c0_i32 = arith.constant 0 : i32
    %c0_i32_0 = arith.constant 0 : i32
    %c0_i32_1 = arith.constant 0 : i32
    return %c0_i32, %c0_i32_0 : i32, i32
  }
  func.func @transform_2(%arg0: i32) -> (i32, i32) {
    %c0_i32 = arith.constant 0 : i32
    %c0_i32_0 = arith.constant 0 : i32
    %c0_i32_1 = arith.constant 0 : i32
    return %c0_i32, %c0_i32_0 : i32, i32
  }
  func.func @transform_3(%arg0: i32) -> (i32, i32) {
    %c0_i32 = arith.constant 0 : i32
    %c0_i32_0 = arith.constant 0 : i32
    %c0_i32_1 = arith.constant 0 : i32
    return %c0_i32, %c0_i32_0 : i32, i32
  }
  func.func @transform_4(%arg0: i32) -> (i32, i32) {
    %c0_i32 = arith.constant 0 : i32
    %c0_i32_0 = arith.constant 0 : i32
    %c0_i32_1 = arith.constant 0 : i32
    return %c0_i32, %c0_i32_0 : i32, i32
  }
  func.func @transform_5(%arg0: i32) -> (i32, i32) {
    %c0_i32 = arith.constant 0 : i32
    %c0_i32_0 = arith.constant 0 : i32
    %c0_i32_1 = arith.constant 0 : i32
    return %c0_i32, %c0_i32_0 : i32, i32
  }
  func.func @transform_6(%arg0: i32) -> (i32, i32) {
    %c0_i32 = arith.constant 0 : i32
    %c0_i32_0 = arith.constant 0 : i32
    %c0_i32_1 = arith.constant 0 : i32
    return %c0_i32, %c0_i32_0 : i32, i32
  }
  func.func @transform_7(%arg0: i32) -> (i32, i32) {
    %c0_i32 = arith.constant 0 : i32
    %c0_i32_0 = arith.constant 0 : i32
    %c0_i32_1 = arith.constant 0 : i32
    return %c0_i32, %c0_i32_0 : i32, i32
  }
  func.func @transform_8(%arg0: i32) -> (i32, i32) {
    %c0_i32 = arith.constant 0 : i32
    %c0_i32_0 = arith.constant 0 : i32
    %c0_i32_1 = arith.constant 0 : i32
    return %c0_i32, %c0_i32_0 : i32, i32
  }
  func.func @transform_9(%arg0: i32) -> (i32, i32) {
    %c0_i32 = arith.constant 0 : i32
    %c0_i32_0 = arith.constant 0 : i32
    %c0_i32_1 = arith.constant 0 : i32
    return %c0_i32, %c0_i32_0 : i32, i32
  }
  func.func @transform_10(%arg0: i32) -> (i32, i32) {
    %c0_i32 = arith.constant 0 : i32
    %c0_i32_0 = arith.constant 0 : i32
    %c0_i32_1 = arith.constant 0 : i32
    return %c0_i32, %c0_i32_0 : i32, i32
  }
  func.func @transform_11(%arg0: i32) -> (i32, i32) {
    %c0_i32 = arith.constant 0 : i32
    %c0_i32_0 = arith.constant 0 : i32
    %c0_i32_1 = arith.constant 0 : i32
    return %c0_i32, %c0_i32_0 : i32, i32
  }
  func.func @transform_12(%arg0: i32) -> (i32, i32) {
    %c0_i32 = arith.constant 0 : i32
    %c0_i32_0 = arith.constant 0 : i32
    %c0_i32_1 = arith.constant 0 : i32
    return %c0_i32, %c0_i32_0 : i32, i32
  }
  func.func @transform_13(%arg0: i32) -> (i32, i32) {
    %c0_i32 = arith.constant 0 : i32
    %c0_i32_0 = arith.constant 0 : i32
    %c0_i32_1 = arith.constant 0 : i32
    return %c0_i32, %c0_i32_0 : i32, i32
  }
  func.func @transform_14(%arg0: i32) -> (i32, i32) {
    %c0_i32 = arith.constant 0 : i32
    %c0_i32_0 = arith.constant 0 : i32
    %c0_i32_1 = arith.constant 0 : i32
    return %c0_i32, %c0_i32_0 : i32, i32
  }
  func.func @transform_15(%arg0: i32) -> (i32, i32) {
    %c0_i32 = arith.constant 0 : i32
    %c0_i32_0 = arith.constant 0 : i32
    %c0_i32_1 = arith.constant 0 : i32
    return %c0_i32, %c0_i32_0 : i32, i32
  }
  func.func @transform_16(%arg0: i32) -> (i32, i32) {
    %c0_i32 = arith.constant 0 : i32
    %c0_i32_0 = arith.constant 0 : i32
    %c0_i32_1 = arith.constant 0 : i32
    return %c0_i32, %c0_i32_0 : i32, i32
  }
  func.func @transform_17(%arg0: i32) -> (i32, i32) {
    %c0_i32 = arith.constant 0 : i32
    %c0_i32_0 = arith.constant 0 : i32
    return %arg0, %c0_i32 : i32, i32
  }
}

</mosaic_0001>

<bundles_post_ra>
// kernel: tpu_custom_call.1
= control target key start
LH: loop header
LB: loop body
LE: loop exit
PB: predicated region body
PF: predicated region fallthrough
CT: control target
= control target key end

     0   :  { %s2378_s0 = inlined_call_operand.vmem [shape: bf16[16,8,8], index: 0, kind: input, shape index: {}]   ;;  %s2379_s1 = inlined_call_operand.vmem [shape: bf16[8,32], index: 1, kind: input, shape index: {}]   ;;  %s2380_s2 = inlined_call_operand.vmem [shape: f32[1,32], index: 2, kind: input, shape index: {}]   ;;  %s2381_s3 = inlined_call_operand.vmem [shape: f32[1,32], index: 3, kind: input, shape index: {}]   ;;  %s2382_s4 = inlined_call_operand.vmem [shape: f32[1,32], index: 4, kind: input, shape index: {}]   ;;  %s2383_s5 = inlined_call_operand.vmem [shape: bf16[160,64], index: 5, kind: input, shape index: {}]   ;;  %s2384_s6 = inlined_call_operand.vmem [shape: f32[1,64], index: 6, kind: input, shape index: {}]   ;;  %s2385_s7 = inlined_call_operand.vmem [shape: f32[1,64], index: 7, kind: input, shape index: {}]   ;;  %s2386_s8 = inlined_call_operand.vmem [shape: f32[1,64], index: 8, kind: input, shape index: {}]   ;;  %s2387_s9 = inlined_call_operand.vmem [shape: bf16[320,128], index: 9, kind: input, shape index: {}]   ;;  %s2388_s10 = inlined_call_operand.vmem [shape: f32[1,128], index: 10, kind: input, shape index: {}]   ;;  %s2389_s11 = inlined_call_operand.vmem [shape: f32[1,128], index: 11, kind: input, shape index: {}]   ;;  %s2390_s12 = inlined_call_operand.vmem [shape: f32[1,128], index: 12, kind: input, shape index: {}]   ;;  %s2391_s13 = inlined_call_operand.vmem [shape: bf16[512,64], index: 13, kind: input, shape index: {}]   ;;  %s2392_s14 = inlined_call_operand.vmem [shape: f32[1,64], index: 14, kind: input, shape index: {}]   ;;  %s2393_s15 = inlined_call_operand.vmem [shape: bf16[64,128], index: 15, kind: input, shape index: {}]   ;;  %s2394_s16 = inlined_call_operand.vmem [shape: f32[1,128], index: 16, kind: input, shape index: {}]   ;;  %s2395_s17 = inlined_call_operand.hbm [shape: f32[8,128], index: 17, kind: output, shape index: {}]  }
   0x1   :  { %2397 = sst [smem:[#allocation5_spill]] %s2378_s0 }
   0x2   :  { %2398 = sst [smem:[#allocation6_spill]] %s2379_s1 }
   0x3   :  { %s2399_s26 = sld [smem:[#allocation6_spill]]  ;;  %vm147_vm0 = vcmask 1043456   ;;  %s2400_s29 = sld [smem:[#allocation5_spill]]  ;;  %vm122_vm1 = vcmask 64512  }
   0x9   :  { %v74_v0 = vld [vmem:[%s2399_s26] sm:$0xf]  ;;  %v1728_v3 = vld [vmem:[%s2400_s29 + $0x8] sm:$0xff]   ;;  %v1729_v4 = vld [vmem:[%s2400_s29 + $0x10] sm:$0xff]  }
   0xa   :  { %v1727_v1 = vld [vmem:[%s2400_s29] sm:$0xff]   ;;  %1648 = vmatprep.subr.msk.bf16.mxu0 %vm147_vm0, %v74_v0  ;;  %v149_v2 = vsel %vm147_vm0, %v74_v0, 0  ;;  %v1730_v5 = vld [vmem:[%s2400_s29 + $0x18] sm:$0xff]   ;;  %v1732_v7 = vld [vmem:[%s2400_s29 + $0x28] sm:$0xff]  }
   0xb   :  { %1607 = vmatpush3.bf16.msra.mxu0 %v149_v2  ;;  %1608 = vmatprep.mubr.msk.bf16.mxu0 %vm122_vm1, %v1727_v1  ;;  %v1731_v6 = vld [vmem:[%s2400_s29 + $0x20] sm:$0xff]   ;;  %v1733_v8 = vld [vmem:[%s2400_s29 + $0x30] sm:$0xff]   ;;  %v1734_v9 = vld [vmem:[%s2400_s29 + $0x38] sm:$0xff]  }
   0xe   :  { %1609 = vmatmul.mubr.msk.bf16.vlgmr.msra.gmra.mrb[0].mxu0 %vm122_vm1, %v1728_v3 }
   0xf   :  { %1612 = vmatprep.mubr.msk.bf16.mxu0 %vm122_vm1, %v1729_v4 }
  0x16   :  { %1613 = vmatmul.mubr.msk.bf16.gmra.mrb[4].mxu0 %vm122_vm1, %v1730_v5 }
  0x17   :  { %1616 = vmatprep.mubr.msk.bf16.mxu0 %vm122_vm1, %v1731_v6 }
  0x1e   :  { %1617 = vmatmul.mubr.msk.bf16.gmra.mrb[8].mxu0 %vm122_vm1, %v1732_v7 }
  0x1f   :  { %1620 = vmatprep.mubr.msk.bf16.mxu0 %vm122_vm1, %v1733_v8 }
  0x26   :  { %1621 = vmatmul.mubr.msk.bf16.gmra.mrb[12].mxu0 %vm122_vm1, %v1734_v9 }
  0x27   :  { %22 = vsyncpa [#allocation3], 0  ;;  %v1735_v10 = vld [vmem:[%s2383_s5] sm:$0xff]   ;;  %v1825_v11 = vmov 0   ;;  %v1736_v12 = vld [vmem:[%s2383_s5 + $0x8] sm:$0xff]   ;;  %v1826_v60 = vmov 0.0  }
  0x28   :  { %533 = vmatprep.subr.bf16.mxu1 %v1825_v11  ;;  %v1737_v13 = vld [vmem:[%s2383_s5 + $0x10] sm:$0xff]   ;;  %v1738_v14 = vld [vmem:[%s2383_s5 + $0x18] sm:$0xff]   ;;  %v1739_v15 = vld [vmem:[%s2383_s5 + $0x20] sm:$0xff]   ;;  %s1827_s22 = smov 32   ;;  %vm399_vm2 = vcmask 261120   ;;  %s1829_s23 = smov 96  }
  0x29   :  { %534 = vmatpush1.bf16.msra.mxu1 %v1735_v10  ;;  %v1740_v16 = vld [vmem:[%s2383_s5 + $0x28] sm:$0xff]   ;;  %v1741_v17 = vld [vmem:[%s2383_s5 + $0x30] sm:$0xff]   ;;  %v1982_v18 = vld [vmem:[%s2380_s2] ss:$0 sm:$0xff]  ;;  %vm408_vm3 = vcmask 523264   ;;  %vm417_vm4 = vcmask 785408  }
  0x2a   :  { %535 = vmatprep.subr.bf16.mxu1 %v1825_v11  ;;  %v1988_v22 = vld [vmem:[%s2381_s3] ss:$0 sm:$0xff]  ;;  %v1742_v30 = vld [vmem:[%s2383_s5 + $0x38] sm:$0xff]   ;;  %v1744_v55 = vld [vmem:[%s2383_s5 + $0x48] sm:$0xff]   ;;  %vm1831_vm7 = vmmov 0  }
  0x2b   :  { %v2000_v33 = vld [vmem:[%s2382_s4] ss:$0 sm:$0xff]  ;;  %vm1467_vm5 = vmneg %vm408_vm3 }
  0x2c   :  { %v1743_v39 = vld [vmem:[%s2383_s5 + $0x40] sm:$0xff]   ;;  %s1828_s5 = smov 64   ;;  %vm1469_vm6 = vmpackc.low %vm1467_vm5, %vm1467_vm5 }
  0x2d   :  { %536 = vmatpush1.bf16.msra.mxu1 %v1736_v12 }
  0x2e   :  { %537 = vmatprep.subr.bf16.mxu1 %v1825_v11 }
  0x31   :  { %538 = vmatpush1.bf16.msra.mxu1 %v1737_v13 }
  0x32   :  { %539 = vmatprep.subr.bf16.mxu1 %v1825_v11 }
  0x35   :  { %540 = vmatpush1.bf16.msra.mxu1 %v1738_v14 }
  0x36   :  { %541 = vmatprep.subr.bf16.mxu1 %v1825_v11 }
  0x39   :  { %542 = vmatpush1.bf16.msra.mxu1 %v1739_v15 }
  0x3a   :  { %543 = vmatprep.subr.bf16.mxu1 %v1825_v11 }
  0x3d   :  { %544 = vmatpush1.bf16.msra.mxu1 %v1740_v16 }
  0x3e   :  { %545 = vmatprep.subr.bf16.mxu1 %v1825_v11 }
  0x41   :  { %546 = vmatpush1.bf16.msra.mxu1 %v1741_v17 }
  0x42   :  { %547 = vmatprep.subr.bf16.mxu1 %v1825_v11 }
  0x45   :  { %548 = vmatpush1.bf16.msra.mxu1 %v1742_v30 }
  0x46   :  { %549 = vmatprep.subr.bf16.mxu1 %v1825_v11 }
  0x49   :  { %550 = vmatpush1.bf16.msra.mxu1 %v1743_v39 }
  0x4a   :  { %551 = vmatprep.subr.bf16.mxu1 %v1825_v11 }
  0x4d   :  { %552 = vmatpush1.bf16.msra.mxu1 %v1744_v55 }
  0xe1   :  { %v1610_v19 = vpop.f32.mrb[0].mxu0 }
  0xe2   :  { %v194_v20 = vadd.f32 %v1610_v19, %v1982_v18  ;;  %v185_v21 = vpop.f32.mrb[1].mxu0 }
  0xe3   :  { %v186_v23 = vadd.f32 %v1982_v18, %v185_v21  ;;  %v1611_v24 = vpop.f32.mrb[2].mxu0 }
  0xe4   :  { %v250_v25 = vmax.f32 %v194_v20, 0.0  ;;  %v197_v26 = vadd.f32 %v1611_v24, %v1982_v18  ;;  %v188_v27 = vpop.f32.mrb[3].mxu0 }
  0xe5   :  { %v248_v28 = vmax.f32 %v186_v23, 0.0  ;;  %v189_v29 = vadd.f32 %v1982_v18, %v188_v27 }
  0xe6   :  { %v273_v31 = vmul.f32 %v1988_v22, %v250_v25  ;;  %v251_v32 = vmax.f32 %v197_v26, 0.0 }
  0xe7   :  { %v271_v34 = vmul.f32 %v1988_v22, %v248_v28  ;;  %v249_v35 = vmax.f32 %v189_v29, 0.0 }
  0xe8   :  { %v274_v36 = vmul.f32 %v1988_v22, %v251_v32  ;;  %v296_v40 = vadd.f32 %v2000_v33, %v273_v31 }
  0xe9   :  { %v272_v37 = vmul.f32 %v1988_v22, %v249_v35  ;;  %v1614_v38 = vpop.f32.mrb[4].mxu0  ;;  %v294_v44 = vadd.f32 %v2000_v33, %v271_v34 }
  0xea   :  { %v297_v41 = vadd.f32 %v2000_v33, %v274_v36  ;;  %v210_v42 = vadd.f32 %v1614_v38, %v1982_v18  ;;  %v201_v43 = vpop.f32.mrb[5].mxu0 }
  0xeb   :  { %v295_v45 = vadd.f32 %v2000_v33, %v272_v37  ;;  %v202_v46 = vadd.f32 %v1982_v18, %v201_v43  ;;  %v1615_v47 = vpop.f32.mrb[6].mxu0 }
  0xec   :  { %v2014_v48 = vmax.f32 %v296_v40, %v297_v41  ;;  %v254_v49 = vmax.f32 %v210_v42, 0.0  ;;  %v213_v50 = vadd.f32 %v1615_v47, %v1982_v18  ;;  %v204_v51 = vpop.f32.mrb[7].mxu0 }
  0xed   :  { %v252_v52 = vmax.f32 %v202_v46, 0.0  ;;  %v205_v53 = vadd.f32 %v1982_v18, %v204_v51  ;;  %v2018_v54 = vmax.f32 %v294_v44, %v295_v45 }
  0xee   :  { %v277_v56 = vmul.f32 %v1988_v22, %v254_v49  ;;  %v255_v57 = vmax.f32 %v213_v50, 0.0 }
  0xef   :  { %v275_v58 = vmul.f32 %v1988_v22, %v252_v52  ;;  %v253_v59 = vmax.f32 %v205_v53, 0.0  ;;  %v1657_v61 = vpack.i.bf16 %v2018_v54, %v1826_v60  ;;  %v1662_v9 = vpack.i.bf16 %v2014_v48, %v2018_v54 }
  0xf0   :  { %v278_v62 = vmul.f32 %v1988_v22, %v255_v57  ;;  %v300_v1 = vadd.f32 %v2000_v33, %v277_v56 }
  0xf1   :  { %v276_v63 = vmul.f32 %v1988_v22, %v253_v59  ;;  %v1618_v0 = vpop.f32.mrb[8].mxu0  ;;  %1658 = vrot.lane.b32.xlu0 %v1657_v61, %s1827_s22  ;;  %v298_v5 = vadd.f32 %v2000_v33, %v275_v58 }
  0xf2   :  { %v301_v2 = vadd.f32 %v2000_v33, %v278_v62  ;;  %v226_v3 = vadd.f32 %v1618_v0, %v1982_v18  ;;  %v217_v4 = vpop.f32.mrb[9].mxu0 }
  0xf3   :  { %v299_v6 = vadd.f32 %v2000_v33, %v276_v63  ;;  %v218_v7 = vadd.f32 %v1982_v18, %v217_v4  ;;  %v1619_v8 = vpop.f32.mrb[10].mxu0 }
  0xf4   :  { %v2038_v10 = vmax.f32 %v300_v1, %v301_v2  ;;  %v258_v11 = vmax.f32 %v226_v3, 0.0  ;;  %v229_v12 = vadd.f32 %v1619_v8, %v1982_v18  ;;  %v220_v13 = vpop.f32.mrb[11].mxu0 }
  0xf5   :  { %v2041_v14 = vmax.f32 %v298_v5, %v299_v6  ;;  %v256_v15 = vmax.f32 %v218_v7, 0.0  ;;  %v221_v16 = vadd.f32 %v1982_v18, %v220_v13  ;;  %1663 = vrot.lane.b32.xlu0 %v1662_v9, %s1828_s5 }
  0xf6   :  { %v281_v17 = vmul.f32 %v1988_v22, %v258_v11  ;;  %v259_v19 = vmax.f32 %v229_v12, 0.0 }
  0xf7   :  { %v279_v20 = vmul.f32 %v1988_v22, %v256_v15  ;;  %v257_v21 = vmax.f32 %v221_v16, 0.0  ;;  %v1667_v23 = vpack.i.bf16 %v2041_v14, %v2014_v48  ;;  %v427_v24 = vpack.c.bf16 %v2038_v10, %v2041_v14 }
  0xf8   :  { %v282_v25 = vmul.f32 %v1988_v22, %v259_v19  ;;  %v1677_v26 = vpack.i.bf16 %v2038_v10, %v2041_v14  ;;  %v304_v29 = vadd.f32 %v2000_v33, %v281_v17 }
  0xf9   :  { %v280_v27 = vmul.f32 %v1988_v22, %v257_v21  ;;  %v1622_v28 = vpop.f32.mrb[12].mxu0  ;;  %1668 = vrot.lane.b32.xlu1 %v1667_v23, %s1829_s23  ;;  %1441 = vmatprep.mubr.msk.bf16.mxu1 %vm399_vm2, %v427_v24  ;;  %v302_v34 = vadd.f32 %v2000_v33, %v279_v20 }
  0xfa   :  { %v305_v30 = vadd.f32 %v2000_v33, %v282_v25  ;;  %v242_v31 = vadd.f32 %v1622_v28, %v1982_v18  ;;  %1678 = vrot.lane.b32.xlu0 %v1677_v26, %s1828_s5  ;;  %v233_v32 = vpop.f32.mrb[13].mxu0 }
  0xfb   :  { %v303_v35 = vadd.f32 %v2000_v33, %v280_v27  ;;  %v234_v36 = vadd.f32 %v1982_v18, %v233_v32  ;;  %v1623_v37 = vpop.f32.mrb[14].mxu0 }
  0xfc   :  { %v2064_v38 = vmax.f32 %v304_v29, %v305_v30  ;;  %v262_v39 = vmax.f32 %v242_v31, 0.0  ;;  %v245_v40 = vadd.f32 %v1623_v37, %v1982_v18  ;;  %v236_v41 = vpop.f32.mrb[15].mxu0 }
  0xfd   :  { %v2067_v42 = vmax.f32 %v302_v34, %v303_v35  ;;  %v260_v43 = vmax.f32 %v234_v36, 0.0  ;;  %v237_v44 = vadd.f32 %v1982_v18, %v236_v41  ;;  %1673 = vrot.lane.b32.xlu1 %v1667_v23, %s1827_s22 }
  0xfe   :  { %v285_v45 = vmul.f32 %v1988_v22, %v262_v39  ;;  %v263_v46 = vmax.f32 %v245_v40, 0.0 }
  0xff   :  { %v283_v47 = vmul.f32 %v1988_v22, %v260_v43  ;;  %v261_v49 = vmax.f32 %v237_v44, 0.0  ;;  %v1682_v50 = vpack.i.bf16 %v2067_v42, %v2038_v10  ;;  %v1692_v57 = vpack.i.bf16 %v2064_v38, %v2067_v42 }
 0x100   :  { %v286_v51 = vmul.f32 %v1988_v22, %v263_v46  ;;  %v308_v18 = vadd.f32 %v2000_v33, %v285_v45  ;;  %v429_v23 = vpack.c.bf16 %v2064_v38, %v2067_v42 }
 0x101   :  { %v284_v52 = vmul.f32 %v1988_v22, %v261_v49  ;;  %1683 = vrot.lane.b32.xlu1 %v1682_v50, %s1829_s23  ;;  %1688 = vrot.lane.b32.xlu0 %v1682_v50, %s1827_s22  ;;  %v306_v55 = vadd.f32 %v2000_v33, %v283_v47 }
 0x102   :  { %v309_v53 = vadd.f32 %v2000_v33, %v286_v51 }
 0x103   :  { %v307_v56 = vadd.f32 %v2000_v33, %v284_v52 }
 0x104   :  { %v317_v58 = vmax.f32 %v308_v18, %v309_v53 }
 0x105   :  { %v316_v59 = vmax.f32 %v306_v55, %v307_v56  ;;  %1693 = vrot.lane.b32.xlu1 %v1692_v57, %s1828_s5 }
 0x106   :  { %v1712_v63 = vpack.i.bf16 %v1826_v60, %v317_v58 }
 0x107   :  { %v1702_v22 = vpack.i.bf16 %v316_v59, %v2064_v38  ;;  %v1707_v61 = vpack.i.bf16 %v317_v58, %v316_v59  ;;  %v431_v62 = vpack.c.bf16 %v317_v58, %v316_v59 }
 0x109   :  { %1703 = vrot.lane.b32.xlu1 %v1702_v22, %s1827_s22  ;;  %1698 = vrot.lane.b32.xlu0 %v1702_v22, %s1829_s23 }
 0x10d   :  { %1713 = vrot.lane.b32.xlu1 %v1712_v63, %s1829_s23  ;;  %1708 = vrot.lane.b32.xlu0 %v1707_v61, %s1828_s5 }
 0x163   :  { %v1659_v33 = vpop.permute.xlu0 %1658 }
 0x164   :  { %v1661_v1 = vunpack.i.h.bf16 %v1659_v33  ;;  %v1660_v2 = vunpack.i.l.bf16 %v1659_v33 }
 0x166   :  { %v401_v6 = vsel %vm399_vm2, 0.0, %v1661_v1  ;;  %v400_v7 = vsel %vm399_vm2, 0.0, %v1660_v2 }
 0x167   :  { %v1664_v0 = vpop.permute.xlu0 %1663 }
 0x168   :  { %v1666_v3 = vunpack.i.h.bf16 %v1664_v0  ;;  %v1665_v4 = vunpack.i.l.bf16 %v1664_v0  ;;  %v1830_v0 = vmov 0.0|0.0  }
 0x16a   :  { %v409_v11 = vsel %vm408_vm3, %v400_v7, %v1665_v4  ;;  %v410_v12 = vsel %vm408_vm3, %v401_v6, %v1666_v3  ;;  %v1747_v4 = vld [vmem:[%s2387_s9 + $0x48] sm:$0xff]   ;;  %v1749_v6 = vld [vmem:[%s2387_s9 + $0x50] sm:$0xff]  }
 0x16b   :  { %v1669_v5 = vpop.permute.xlu1 %1668  ;;  %v1750_v7 = vld [vmem:[%s2387_s9 + $0x10] sm:$0xff]  }
 0x16c   :  { %v1671_v8 = vunpack.i.h.bf16 %v1669_v5  ;;  %v1670_v9 = vunpack.i.l.bf16 %v1669_v5  ;;  %v1679_v19 = vpop.permute.xlu0 %1678  ;;  %v1748_v5 = vld [vmem:[%s2387_s9 + $0x8] sm:$0xff]  }
 0x16d   :  { %v1681_v26 = vunpack.i.h.bf16 %v1679_v19  ;;  %v1680_v27 = vunpack.i.l.bf16 %v1679_v19 }
 0x16e   :  { %v418_v13 = vsel %vm417_vm4, %v409_v11, %v1670_v9  ;;  %v419_v15 = vsel %vm417_vm4, %v410_v12, %v1671_v8  ;;  %v2148_v8 = vld [vmem:[%s2384_s6] ss:$0 sm:$0xff] }
 0x16f   :  { %v1674_v16 = vpop.permute.xlu1 %1673  ;;  %v426_v17 = vpack.c.bf16 %v419_v15, %v418_v13  ;;  %v2154_v13 = vld [vmem:[%s2385_s7] ss:$0 sm:$0xff] }
 0x170   :  { %v1676_v20 = vunpack.i.h.bf16 %v1674_v16  ;;  %v1675_v21 = vunpack.i.l.bf16 %v1674_v16 }
 0x171   :  { %566 = vmatmul.mubr.bf16.vlgmr.msra.gmra.mrb[0].mxu1 %v426_v17 }
 0x172   :  { %v403_v24 = vsel %vm399_vm2, %v2014_v48, %v1676_v20  ;;  %v402_v25 = vsel %vm399_vm2, %v2018_v54, %v1675_v21  ;;  %1442 = vmatprep.mubr.msk.bf16.mxu1 %vm399_vm2, %v429_v23  ;;  %v1751_v20 = vld [vmem:[%s2387_s9 + $0x58] sm:$0xff]   ;;  %v1753_v23 = vld [vmem:[%s2387_s9 + $0x60] sm:$0xff]  }
 0x173   :  { %v1684_v28 = vpop.permute.xlu1 %1683  ;;  %v1689_v31 = vpop.permute.xlu0 %1688  ;;  %v411_v32 = vsel %vm408_vm3, %v402_v25, %v1680_v27  ;;  %v412_v34 = vsel %vm408_vm3, %v403_v24, %v1681_v26  ;;  %v1752_v21 = vld [vmem:[%s2387_s9 + $0x18] sm:$0xff]   ;;  %v2170_v26 = vld [vmem:[%s2386_s8] ss:$0 sm:$0xff] }
 0x174   :  { %v1686_v29 = vunpack.i.h.bf16 %v1684_v28  ;;  %v1685_v30 = vunpack.i.l.bf16 %v1684_v28  ;;  %v1691_v39 = vunpack.i.h.bf16 %v1689_v31  ;;  %v1690_v54 = vunpack.i.l.bf16 %v1689_v31  ;;  %v1754_v27 = vld [vmem:[%s2387_s9 + $0x20] sm:$0xff]  }
 0x176   :  { %v420_v35 = vsel %vm417_vm4, %v411_v32, %v1685_v30  ;;  %v421_v36 = vsel %vm417_vm4, %v412_v34, %v1686_v29  ;;  %v405_v45 = vsel %vm399_vm2, %v2038_v10, %v1691_v39  ;;  %v404_v46 = vsel %vm399_vm2, %v2041_v14, %v1690_v54  ;;  %v1755_v29 = vld [vmem:[%s2387_s9 + $0x68] sm:$0xff]  }
 0x177   :  { %v1694_v48 = vpop.permute.xlu1 %1693  ;;  %v428_v37 = vpack.c.bf16 %v421_v36, %v420_v35 }
 0x178   :  { %v1696_v40 = vunpack.i.h.bf16 %v1694_v48  ;;  %v1695_v41 = vunpack.i.l.bf16 %v1694_v48  ;;  %v1756_v48 = vld [vmem:[%s2387_s9 + $0x28] sm:$0xff]  }
 0x179   :  { %574 = vmatmul.mubr.bf16.gmra.mrb[4].mxu1 %v428_v37 }
 0x17a   :  { %1443 = vmatprep.mubr.msk.bf16.mxu1 %vm399_vm2, %v431_v62  ;;  %v413_v50 = vsel %vm408_vm3, %v404_v46, %v1695_v41  ;;  %v414_v51 = vsel %vm408_vm3, %v405_v45, %v1696_v40  ;;  %v1757_v41 = vld [vmem:[%s2387_s9 + $0x70] sm:$0xff]  }
 0x17b   :  { %v1704_v43 = vpop.permute.xlu1 %1703  ;;  %v1699_v44 = vpop.permute.xlu0 %1698  ;;  %v1758_v46 = vld [vmem:[%s2387_s9 + $0x30] sm:$0xff]  }
 0x17c   :  { %v1701_v47 = vunpack.i.h.bf16 %v1699_v44  ;;  %v1700_v49 = vunpack.i.l.bf16 %v1699_v44  ;;  %v1706_v52 = vunpack.i.h.bf16 %v1704_v43  ;;  %v1705_v18 = vunpack.i.l.bf16 %v1704_v43 }
 0x17e   :  { %v422_v53 = vsel %vm417_vm4, %v413_v50, %v1700_v49  ;;  %v423_v55 = vsel %vm417_vm4, %v414_v51, %v1701_v47  ;;  %v407_v14 = vsel %vm399_vm2, %v2064_v38, %v1706_v52  ;;  %v406_v62 = vsel %vm399_vm2, %v2067_v42, %v1705_v18  ;;  %v1745_v38 = vld [vmem:[%s2387_s9 + $0x40] sm:$0xff]  }
 0x17f   :  { %v1714_v56 = vpop.permute.xlu1 %1713  ;;  %v1709_v57 = vpop.permute.xlu0 %1708  ;;  %v430_v58 = vpack.c.bf16 %v423_v55, %v422_v53  ;;  %v1746_v42 = vld [vmem:[%s2387_s9] sm:$0xff]   ;;  %1523 = vmatprep.subr.bf16.mxu0 %v1745_v38  ;;  %v1759_v55 = vld [vmem:[%s2387_s9 + $0x78] sm:$0xff]  }
 0x180   :  { %v1716_v59 = vunpack.i.h.bf16 %v1714_v56  ;;  %v1715_v10 = vunpack.i.l.bf16 %v1714_v56  ;;  %v1711_v22 = vunpack.i.h.bf16 %v1709_v57  ;;  %v1710_v61 = vunpack.i.l.bf16 %v1709_v57  ;;  %1524 = vmatpush3.bf16.msra.mxu0 %v1746_v42  ;;  %v1760_v56 = vld [vmem:[%s2387_s9 + $0x38] sm:$0xff]  }
 0x181   :  { %582 = vmatmul.mubr.bf16.gmra.mrb[8].mxu1 %v430_v58  ;;  %1525 = vmatprep.subr.bf16.mxu0 %v1747_v4 }
 0x182   :  { %v416_v63 = vsel %vm408_vm3, %v407_v14, %v1711_v22  ;;  %v415_v33 = vsel %vm408_vm3, %v406_v62, %v1710_v61  ;;  %589 = vmatprep.mubr.bf16.mxu1 %v1830_v0  ;;  %v1761_v22 = vld [vmem:[%s2387_s9 + $0x80] sm:$0xff]  }
 0x183   :  { %v424_v1 = vsel %vm417_vm4, %v415_v33, %v1715_v10  ;;  %v425_v2 = vsel %vm417_vm4, %v416_v63, %v1716_v59 }
 0x184   :  { %v432_v3 = vpack.c.bf16 %v425_v2, %v424_v1  ;;  %1526 = vmatpush3.bf16.msra.mxu0 %v1748_v5 }
 0x185   :  { %1527 = vmatprep.subr.bf16.mxu0 %v1749_v6 }
 0x188   :  { %1528 = vmatpush3.bf16.msra.mxu0 %v1750_v7 }
 0x189   :  { %590 = vmatmul.mubr.bf16.gmra.mrb[12].mxu1 %v432_v3  ;;  %1529 = vmatprep.subr.bf16.mxu0 %v1751_v20 }
 0x18c   :  { %1530 = vmatpush3.bf16.msra.mxu0 %v1752_v21 }
 0x18d   :  { %1531 = vmatprep.subr.bf16.mxu0 %v1753_v23 }
 0x190   :  { %1532 = vmatpush3.bf16.msra.mxu0 %v1754_v27 }
 0x191   :  { %1533 = vmatprep.subr.bf16.mxu0 %v1755_v29 }
 0x194   :  { %1534 = vmatpush3.bf16.msra.mxu0 %v1756_v48  ;;  %v1764_v48 = vld [vmem:[%s2387_s9 + $0x98] sm:$0xff]  }
 0x195   :  { %1535 = vmatprep.subr.bf16.mxu0 %v1757_v41  ;;  %v1769_v41 = vld [vmem:[%s2391_s13 + $0x48] sm:$0xff]  }
 0x198   :  { %1536 = vmatpush3.bf16.msra.mxu0 %v1758_v46  ;;  %v1775_v46 = vld [vmem:[%s2391_s13 + $0x10] sm:$0xff]  }
 0x199   :  { %1537 = vmatprep.subr.bf16.mxu0 %v1759_v55  ;;  %v1783_v55 = vld [vmem:[%s2391_s13 + $0x20] sm:$0xff]  }
 0x19c   :  { %1538 = vmatpush3.bf16.msra.mxu0 %v1760_v56  ;;  %v1784_v56 = vld [vmem:[%s2391_s13 + $0xa0] sm:$0xff]  }
 0x19d   :  { %1624 = vmatprep.subr.bf16.mxu0 %v1761_v22 }
 0x244   :  { %v567_v9 = vpop.f32.mrb[0].mxu1 }
 0x245   :  { %v568_v11 = vadd.f32 %v2148_v8, %v567_v9  ;;  %v569_v12 = vpop.f32.mrb[1].mxu1 }
 0x246   :  { %v570_v15 = vpop.f32.mrb[2].mxu1 }
 0x247   :  { %v598_v16 = vmax.f32 %v568_v11, 0.0  ;;  %v571_v17 = vadd.f32 %v2148_v8, %v570_v15  ;;  %v572_v19 = vpop.f32.mrb[3].mxu1 }
 0x248   :  { %v1767_v19 = vld [vmem:[%s2391_s13] sm:$0xff]  }
 0x249   :  { %v613_v24 = vmul.f32 %v2154_v13, %v598_v16  ;;  %v599_v25 = vmax.f32 %v571_v17, 0.0 }
 0x24b   :  { %v614_v28 = vmul.f32 %v2154_v13, %v599_v25  ;;  %v628_v31 = vadd.f32 %v2170_v26, %v613_v24 }
 0x24c   :  { %v575_v30 = vpop.f32.mrb[4].mxu1 }
 0x24d   :  { %v629_v32 = vadd.f32 %v2170_v26, %v614_v28  ;;  %v576_v34 = vadd.f32 %v2148_v8, %v575_v30  ;;  %v577_v35 = vpop.f32.mrb[5].mxu1  ;;  %v1762_v30 = vld [vmem:[%s2387_s9 + $0x88] sm:$0xff]  }
 0x24e   :  { %v578_v36 = vpop.f32.mrb[6].mxu1 }
 0x24f   :  { %v600_v37 = vmax.f32 %v576_v34, 0.0  ;;  %v579_v39 = vadd.f32 %v2148_v8, %v578_v36  ;;  %v580_v54 = vpop.f32.mrb[7].mxu1  ;;  %v636_v40 = vmax.f32 %v628_v31, %v629_v32  ;;  %v1763_v36 = vld [vmem:[%s2387_s9 + $0x90] sm:$0xff]   ;;  %s1832_s9 = smov [#allocation2]  }
 0x250   :  { %v1768_v54 = vld [vmem:[%s2391_s13 + $0x80] sm:$0xff]   ;;  %s1403_s3 = sshll.u32 %s1832_s9, 4  ;;  %s1404_s3 = int_to_ptr.vmem [resolvable:$true] %s1403_s3 }
 0x251   :  { %v615_v43 = vmul.f32 %v2154_v13, %v600_v37  ;;  %v601_v44 = vmax.f32 %v579_v39, 0.0  ;;  %v1722_v45 = vpack.i.bf16 %v636_v40, %v1826_v60  ;;  %v1766_v39 = vld [vmem:[%s2391_s13 + $0xc0] sm:$0xff]   ;;  %p1806_p1 = scmp.lt.s32.totalorder %s1404_s3, %s1404_s3 }
 0x253   :  { %v616_v47 = vmul.f32 %v2154_v13, %v601_v44  ;;  %1723 = vrot.lane.b32.xlu1 %v1722_v45, %s1828_s5  ;;  %v630_v50 = vadd.f32 %v2170_v26, %v615_v43  ;;  %v1772_v43 = vld [vmem:[%s2391_s13 + $0x88] sm:$0xff]   ;;  %v1774_v45 = vld [vmem:[%s2391_s13 + $0xd0] sm:$0xff]  }
 0x254   :  { %v583_v49 = vpop.f32.mrb[8].mxu1  ;;  %v1771_v44 = vld [vmem:[%s2391_s13 + $0x8] sm:$0xff]  }
 0x255   :  { %v631_v51 = vadd.f32 %v2170_v26, %v616_v47  ;;  %v584_v52 = vadd.f32 %v2148_v8, %v583_v49  ;;  %v585_v18 = vpop.f32.mrb[9].mxu1  ;;  %v1776_v47 = vld [vmem:[%s2391_s13 + $0x90] sm:$0xff]   ;;  %v1778_v49 = vld [vmem:[%s2391_s13 + $0xd8] sm:$0xff]  }
 0x256   :  { %v586_v53 = vpop.f32.mrb[10].mxu1  ;;  %v1781_v18 = vld [vmem:[%s2391_s13 + $0x60] sm:$0xff]  }
 0x257   :  { %v602_v57 = vmax.f32 %v584_v52, 0.0  ;;  %v587_v58 = vadd.f32 %v2148_v8, %v586_v53  ;;  %v588_v59 = vpop.f32.mrb[11].mxu1  ;;  %v637_v10 = vmax.f32 %v630_v50, %v631_v51  ;;  %v1777_v50 = vld [vmem:[%s2391_s13 + $0x58] sm:$0xff]   ;;  %v1782_v53 = vld [vmem:[%s2391_s13 + $0xe0] sm:$0xff]  }
 0x258   :  { %v1780_v51 = vld [vmem:[%s2391_s13 + $0x98] sm:$0xff]   ;;  %v1788_v59 = vld [vmem:[%s2391_s13 + $0xa8] sm:$0xff]  }
 0x259   :  { %v617_v61 = vmul.f32 %v2154_v13, %v602_v57  ;;  %v603_v14 = vmax.f32 %v587_v58, 0.0  ;;  %v1779_v52 = vld [vmem:[%s2391_s13 + $0x18] sm:$0xff]   ;;  %v1786_v57 = vld [vmem:[%s2391_s13 + $0xe8] sm:$0xff]  }
 0x25a   :  { %v1785_v58 = vld [vmem:[%s2391_s13 + $0x68] sm:$0xff]  }
 0x25b   :  { %v618_v62 = vmul.f32 %v2154_v13, %v603_v14  ;;  %v632_v33 = vadd.f32 %v2170_v26, %v617_v61  ;;  %v1789_v61 = vld [vmem:[%s2391_s13 + $0x70] sm:$0xff]  }
 0x25c   :  { %v591_v63 = vpop.f32.mrb[12].mxu1  ;;  %v1792_v14 = vld [vmem:[%s2391_s13 + $0xb0] sm:$0xff]  }
 0x25d   :  { %v633_v1 = vadd.f32 %v2170_v26, %v618_v62  ;;  %v592_v2 = vadd.f32 %v2148_v8, %v591_v63  ;;  %v593_v3 = vpop.f32.mrb[13].mxu1  ;;  %v1791_v62 = vld [vmem:[%s2391_s13 + $0x30] sm:$0xff]   ;;  %v1794_v63 = vld [vmem:[%s2391_s13 + $0xf8] sm:$0xff]  }
 0x25e   :  { %v594_v38 = vpop.f32.mrb[14].mxu1 }
 0x25f   :  { %v638_v42 = vmax.f32 %v632_v33, %v633_v1  ;;  %v604_v4 = vmax.f32 %v592_v2, 0.0  ;;  %v595_v5 = vadd.f32 %v2148_v8, %v594_v38  ;;  %v596_v6 = vpop.f32.mrb[15].mxu1  ;;  %v1765_v8 = vld [vmem:[%s2391_s13 + $0x40] sm:$0xff]   ;;  %v1793_v33 = vld [vmem:[%s2391_s13 + $0x78] sm:$0xff]  }
 0x260   :  { %1557 = vmatprep.subr.bf16.mxu1 %v1765_v8  ;;  %v1795_v1 = vld [vmem:[%s2391_s13 + $0x38] sm:$0xff]  }
 0x261   :  { %v619_v7 = vmul.f32 %v2154_v13, %v604_v4  ;;  %v605_v9 = vmax.f32 %v595_v5, 0.0  ;;  %v1717_v11 = vpack.i.bf16 %v638_v42, %v637_v10  ;;  %1558 = vmatpush3.bf16.msra.mxu1 %v1767_v19  ;;  %v1796_v2 = vld [vmem:[%s2391_s13 + $0xb8] sm:$0xff]  }
 0x262   :  { %1559 = vmatprep.subr.bf16.mxu1 %v1769_v41 }
 0x263   :  { %v620_v12 = vmul.f32 %v2154_v13, %v605_v9  ;;  %1718 = vrot.lane.b32.xlu0 %v1717_v11, %s1828_s5  ;;  %v634_v15 = vadd.f32 %v2170_v26, %v619_v7 }
 0x265   :  { %v635_v16 = vadd.f32 %v2170_v26, %v620_v12  ;;  %1560 = vmatpush3.bf16.msra.mxu1 %v1771_v44 }
 0x267   :  { %v639_v17 = vmax.f32 %v634_v15, %v635_v16 }
 0x269   :  { %656 = vrot.lane.b32.xlu0 %v639_v17, %s1828_s5  ;;  %v667_v37 = vpack.c.bf16 %v639_v17, %v638_v42 }
 0x2c5   :  { %v1724_v13 = vpop.permute.xlu1 %1723 }
 0x2c6   :  { %v1726_v21 = vunpack.i.h.bf16 %v1724_v13  ;;  %v1725_v23 = vunpack.i.l.bf16 %v1724_v13 }
 0x2c8   :  { %v1470_v29 = vpack.c.bf16 %v1726_v21, %v1725_v23  ;;  %v664_v32 = vsel %vm408_vm3, %v639_v17, %v1725_v23  ;;  %v1446_v17 = vld [vmem:[%s2388_s10] ss:$0 sm:$0xff] }
 0x2d5   :  { %v1719_v20 = vpop.permute.xlu0 %1718 }
 0x2d6   :  { %v1721_v24 = vunpack.i.h.bf16 %v1719_v20  ;;  %v1720_v25 = vunpack.i.l.bf16 %v1719_v20 }
 0x2d8   :  { %v661_v26 = vsel %vm408_vm3, %v636_v40, %v1720_v25  ;;  %v662_v27 = vsel %vm408_vm3, %v637_v10, %v1721_v24  ;;  %v1770_v40 = vld [vmem:[%s2391_s13 + $0xc8] sm:$0xff]   ;;  %v1473_v24 = vld [vmem:[%s2389_s11] ss:$0 sm:$0xff] }
 0x2d9   :  { %v666_v28 = vpack.c.bf16 %v662_v27, %v661_v26  ;;  %v1787_v10 = vld [vmem:[%s2391_s13 + $0x28] sm:$0xff]  }
 0x2db   :  { %v657_v31 = vpop.permute.xlu0 %656  ;;  %873 = vmatprep.mubr.bf16.mxu0 %v666_v28 }
 0x2dc   :  { %v663_v34 = vsel %vm408_vm3, %v638_v42, %v657_v31  ;;  %1471 = vmatmul.mubr.msk.bf16.vlgmr.msra.gmra.mrb[16].mxu0 %vm1469_vm6, %v1470_v29 }
 0x2dd   :  { %v668_v35 = vpack.c.bf16 %v664_v32, %v663_v34  ;;  %1625 = vmatpush3.bf16.msra.mxu0 %v1761_v22  ;;  %v1790_v22 = vld [vmem:[%s2391_s13 + $0xf0] sm:$0xff]  }
 0x2de   :  { %1626 = vmatprep.subr.bf16.mxu0 %v1762_v30 }
 0x2df   :  { %881 = vmatprep.mubr.bf16.mxu0 %v668_v35  ;;  %v1474_v35 = vld [vmem:[%s2390_s12] ss:$0 sm:$0xff] }
 0x2e1   :  { %1627 = vmatpush3.bf16.msra.mxu0 %v1762_v30 }
 0x2e2   :  { %1628 = vmatprep.subr.bf16.mxu0 %v1763_v36 }
 0x2e4   :  { %882 = vmatmul.mubr.bf16.gmra.mrb[20].mxu0 %v666_v28 }
 0x2e5   :  { %1629 = vmatpush3.bf16.msra.mxu0 %v1763_v36  ;;  %1632 = vmatprep.mubr.msk.bf16.mxu0 %vm408_vm3, %v667_v37 }
 0x2e6   :  { %1630 = vmatprep.subr.bf16.mxu0 %v1764_v48 }
 0x2e9   :  { %1631 = vmatpush3.bf16.msra.mxu0 %v1764_v48 }
 0x2ea   :  { %1579 = vmatprep.subr.bf16.mxu0 %v1766_v39 }
 0x2ec   :  { %1633 = vmatmul.mubr.bf16.vlgmr.msra.gmra.mrb[24].mxu0 %v1830_v0  ;;  %v1773_v0 = vld [vmem:[%s2391_s13 + $0x50] sm:$0xff]  }
 0x2ed   :  { %1580 = vmatpush3.bf16.msra.mxu0 %v1768_v54  ;;  %1561 = vmatprep.subr.bf16.mxu1 %v1773_v0 }
 0x2ee   :  { %1581 = vmatprep.subr.bf16.mxu0 %v1770_v40  ;;  %1562 = vmatpush3.bf16.msra.mxu1 %v1775_v46 }
 0x2ef   :  { %1563 = vmatprep.subr.bf16.mxu1 %v1777_v50  ;;  %v1798_v50 = vld [vmem:[%s2393_s15 + $0x8] sm:$0xff]  }
 0x2f1   :  { %1582 = vmatpush3.bf16.msra.mxu0 %v1772_v43 }
 0x2f2   :  { %1583 = vmatprep.subr.bf16.mxu0 %v1774_v45  ;;  %1564 = vmatpush3.bf16.msra.mxu1 %v1779_v52  ;;  %v1800_v52 = vld [vmem:[%s2393_s15 + $0x18] sm:$0xff]  }
 0x2f3   :  { %1565 = vmatprep.subr.bf16.mxu1 %v1781_v18 }
 0x2f5   :  { %1584 = vmatpush3.bf16.msra.mxu0 %v1776_v47  ;;  %v1797_v47 = vld [vmem:[%s2393_s15] sm:$0xff]  }
 0x2f6   :  { %1585 = vmatprep.subr.bf16.mxu0 %v1778_v49  ;;  %1566 = vmatpush3.bf16.msra.mxu1 %v1783_v55 }
 0x2f7   :  { %1567 = vmatprep.subr.bf16.mxu1 %v1785_v58 }
 0x2f9   :  { %1586 = vmatpush3.bf16.msra.mxu0 %v1780_v51  ;;  %v1799_v51 = vld [vmem:[%s2393_s15 + $0x10] sm:$0xff]  }
 0x2fa   :  { %1587 = vmatprep.subr.bf16.mxu0 %v1782_v53  ;;  %1568 = vmatpush3.bf16.msra.mxu1 %v1787_v10 }
 0x2fb   :  { %1569 = vmatprep.subr.bf16.mxu1 %v1789_v61 }
 0x2fd   :  { %1588 = vmatpush3.bf16.msra.mxu0 %v1784_v56 }
 0x2fe   :  { %1589 = vmatprep.subr.bf16.mxu0 %v1786_v57  ;;  %1570 = vmatpush3.bf16.msra.mxu1 %v1791_v62  ;;  %v1475_v57 = vld [vmem:[%s2392_s14] ss:$0 sm:$0xff]  ;;  %s1801_s14 = scalar_lea.vmem %s1404_s3, 128 }
 0x2ff   :  { %1571 = vmatprep.subr.bf16.mxu1 %v1793_v33  ;;  %p1802_p0 = scmp.ne.s32.totalorder %s1404_s3, %s1801_s14  ;;  %p1807_p2 = scmp.lt.s32.totalorder %s1801_s14, %s1801_s14 }
 0x301   :  { %1590 = vmatpush3.bf16.msra.mxu0 %v1788_v59  ;;  %p1808_p3 = por %p1807_p2, %p1806_p1 }
 0x302   :  { %1591 = vmatprep.subr.bf16.mxu0 %v1790_v22  ;;  %1572 = vmatpush3.bf16.msra.mxu1 %v1795_v1 }
 0x303   :  { %1636 = vmatprep.subr.bf16.mxu1 %v1826_v60  ;;  %p1809_p4 = pnand %p1808_p3, %p1802_p0 }
 0x305   :  { %1592 = vmatpush3.bf16.msra.mxu0 %v1792_v14 }
 0x306   :  { %1593 = vmatprep.subr.bf16.mxu0 %v1794_v63 }
 0x309   :  { %1594 = vmatpush3.bf16.msra.mxu0 %v1796_v2 }
 0x3af   :  { %v1539_v3 = vpop.f32.mrb[16].mxu0 }
 0x3b0   :  { %v1540_v38 = vpop.f32.mrb[17].mxu0 }
 0x3b1   :  { %v1541_v42 = vadd.f32 %v1540_v38, %v1539_v3  ;;  %v1542_v4 = vpop.f32.mrb[18].mxu0 }
 0x3b2   :  { %v1543_v5 = vpop.f32.mrb[19].mxu0 }
 0x3b3   :  { %v1544_v6 = vadd.f32 %v1543_v5, %v1542_v4  ;;  %v876_v13 = vadd.f32 %v1541_v42, %v1446_v17 }
 0x3b5   :  { %v879_v27 = vadd.f32 %v1544_v6, %v1446_v17 }
 0x3b7   :  { %v1545_v7 = vpop.f32.mrb[20].mxu0 }
 0x3b8   :  { %v1546_v9 = vpop.f32.mrb[21].mxu0 }
 0x3b9   :  { %v1547_v11 = vadd.f32 %v1546_v9, %v1545_v7  ;;  %v1548_v12 = vpop.f32.mrb[22].mxu0 }
 0x3ba   :  { %v1549_v15 = vpop.f32.mrb[23].mxu0 }
 0x3bb   :  { %v1550_v16 = vadd.f32 %v1549_v15, %v1548_v12  ;;  %v884_v8 = vadd.f32 %v1547_v11, %v1446_v17 }
 0x3bd   :  { %v887_v23 = vadd.f32 %v1550_v16, %v1446_v17 }
 0x3bf   :  { %v1634_v19 = vpop.f32.mrb[24].mxu0 }
 0x3c0   :  { %v933_v20 = vadd.f32 %v1634_v19, %v884_v8  ;;  %v924_v21 = vpop.f32.mrb[25].mxu0 }
 0x3c1   :  { %v925_v25 = vadd.f32 %v924_v21, %v876_v13  ;;  %v1635_v26 = vpop.f32.mrb[26].mxu0 }
 0x3c2   :  { %v941_v28 = vmax.f32 %v933_v20, 0.0  ;;  %v936_v29 = vadd.f32 %v1635_v26, %v887_v23  ;;  %v927_v30 = vpop.f32.mrb[27].mxu0 }
 0x3c3   :  { %v939_v31 = vmax.f32 %v925_v25, 0.0  ;;  %v928_v32 = vadd.f32 %v927_v30, %v879_v27 }
 0x3c4   :  { %v952_v34 = vmul.f32 %v1473_v24, %v941_v28  ;;  %v942_v36 = vmax.f32 %v936_v29, 0.0 }
 0x3c5   :  { %v950_v48 = vmul.f32 %v1473_v24, %v939_v31  ;;  %v940_v37 = vmax.f32 %v928_v32, 0.0 }
 0x3c6   :  { %v953_v39 = vmul.f32 %v1473_v24, %v942_v36  ;;  %v963_v54 = vadd.f32 %v1474_v35, %v952_v34 }
 0x3c7   :  { %v951_v40 = vmul.f32 %v1473_v24, %v940_v37  ;;  %v961_v41 = vadd.f32 %v1474_v35, %v950_v48 }
 0x3c8   :  { %v964_v43 = vadd.f32 %v1474_v35, %v953_v39  ;;  %v967_v45 = vpack.c.bf16 %v963_v54, %v963_v54 }
 0x3c9   :  { %v962_v44 = vadd.f32 %v1474_v35, %v951_v40  ;;  %v965_v49 = vpack.c.bf16 %v961_v41, %v961_v41 }
 0x3ca   :  { %v968_v0 = vpack.c.bf16 %v964_v43, %v964_v43 }
 0x3cb   :  { %v966_v46 = vpack.c.bf16 %v962_v44, %v962_v44 }
 0x3cc   :  { %1304 = vmatprep.mubr.bf16.mxu0 %v968_v0 }
 0x3cd   :  { %1264 = vmatprep.mubr.bf16.mxu1 %v966_v46  ;;  %1305 = vmatmul.mubr.bf16.vlgmr.msra.gmra.mrb[28].mxu0 %v967_v45 }
 0x3ce   :  { %1265 = vmatmul.mubr.bf16.vlgmr.msra.gmra.mrb[16].mxu1 %v965_v49 }
 0x3cf   :  { %1637 = vmatpush3.bf16.msra.mxu1 %v1797_v47  ;;  %1644 = vmatprep.mubr.msk.bf16.mxu1 %vm1831_vm7, %v1826_v60 }
 0x3d0   :  { %1638 = vmatprep.subr.bf16.mxu1 %v1826_v60 }
 0x3d3   :  { %1639 = vmatpush3.bf16.msra.mxu1 %v1798_v50 }
 0x3d4   :  { %1640 = vmatprep.subr.bf16.mxu1 %v1826_v60 }
 0x3d7   :  { %1641 = vmatpush3.bf16.msra.mxu1 %v1799_v51 }
 0x3d8   :  { %1642 = vmatprep.subr.bf16.mxu1 %v1826_v60  ;;  %v1508_v60 = vld [vmem:[%s2394_s16] ss:$0 sm:$0xff] }
 0x3db   :  { %1643 = vmatpush3.bf16.msra.mxu1 %v1800_v52 }
 0x4a0   :  { %v1595_v18 = vpop.f32.mrb[28].mxu0 }
 0x4a1   :  { %v1573_v53 = vpop.f32.mrb[16].mxu1  ;;  %v1596_v55 = vpop.f32.mrb[29].mxu0 }
 0x4a2   :  { %v1597_v56 = vadd.f32 %v1596_v55, %v1595_v18  ;;  %v1574_v58 = vpop.f32.mrb[17].mxu1  ;;  %v1598_v59 = vpop.f32.mrb[30].mxu0 }
 0x4a3   :  { %v1575_v10 = vadd.f32 %v1574_v58, %v1573_v53  ;;  %v1576_v22 = vpop.f32.mrb[18].mxu1  ;;  %v1599_v61 = vpop.f32.mrb[31].mxu0 }
 0x4a4   :  { %v1577_v14 = vpop.f32.mrb[19].mxu1 }
 0x4a5   :  { %v1267_v62 = vadd.f32 %v1575_v10, %v1475_v57 }
 0x4a7   :  { %v1307_v63 = vadd.f32 %v1597_v56, %v1267_v62 }
 0x4a9   :  { %v1312_v33 = vmax.f32 %v1307_v63, 0.0 }
 0x4ab   :  { %v1313_v1 = vpack.c.bf16 %v1312_v33, %v1312_v33 }
 0x4ad   :  { %1645 = vmatmul.mubr.msk.bf16.vlgmr.msra.gmra.mrb[20].mxu1 %vm408_vm3, %v1313_v1 }
 0x580   :  { %v1390_v2 = vpop.f32.mrb[20].mxu1 }
 0x581   :  { %v1391_v3 = vadd.f32 %v1508_v60, %v1390_v2  ;;  %v1646_v38 = vpop.f32.mrb[21].mxu1 }
 0x582   :  { %v1393_v42 = vpop.f32.mrb[22].mxu1 }
 0x583   :  { %1396 = vst [vmem:[#allocation2] sm:$0xff] %v1391_v3  ;;  %v1647_v4 = vpop.f32.mrb[23].mxu1 }
 0x584   :  { %1812 = shalt.err (!%p1809_p4)
}
 0x585   :  { %s1813_s16 = scalar_lea.hbm %s2395_s17, 128 }
 0x586   :  { %p1814_p5 = scmp.ne.s32.totalorder %s2395_s17, %s1813_s16  ;;  %p1817_p6 = scmp.lt.u32.totalorder %s1813_s16, %s2395_s17 }
 0x588   :  { %p1819_p7 = pnand %p1817_p6, %p1814_p5 }
 0x58a   :  { %1822 = shalt.err (!%p1819_p7)
}
 0x58b   :  { %1406 = dma.vmem_to_hbm [thread:$0]  %s1404_s3, 128, %s2395_s17, [#allocation3]  }
 0x58c   :  { %1823 = dma.done.wait [#allocation3], 128  }
 0x58d   :  { %1824 = vsyncadd [#allocation3], 4294967168 }
 0x58e   :  { %1410 = vsyncpa [#allocation3], 1 }

</bundles_post_ra>
